<compile_context>
chip_gen: v5e
topology: v5e:2x2
jax: 0.10.0
libtpu: 0.0.40
codegen_flags: <defaults>
</compile_context>

<pallas_src>
import functools

import jax
import jax.numpy as jnp
from jax.experimental import pallas as pl
from jax.experimental.pallas import tpu as pltpu

IN_F, H1, H2, OUT_F = 5, 64, 32, 2
TB_MAX = 8192  # batch tile cap; ~12 MiB/step in f32, fits all generations.


def robot_nn_kernel(x_ref, w1_ref, b1_ref, w2_ref, b2_ref, w3_ref, b3_ref, out_ref):
    hi = jax.lax.Precision.HIGHEST

    x = x_ref[...]                                                    # (TB, 5)

    # Layer 1: contract the trailing feature axis of both operands
    # (w1 (64,5) . x (TB,5)^T) -> (64, TB): batch lands on the lane axis, so
    # every following activation / the output is lane-dense.
    h1 = jax.lax.dot_general(
        w1_ref[...], x, (((1,), (1,)), ((), ())),
        precision=hi, preferred_element_type=jnp.float32)
    h1 = jnp.maximum(h1 + b1_ref[...], 0.0)                           # (64, TB)

    h2 = jnp.dot(w2_ref[...], h1, precision=hi,
                 preferred_element_type=jnp.float32)
    h2 = jnp.maximum(h2 + b2_ref[...], 0.0)                           # (32, TB)

    h3 = jnp.dot(w3_ref[...], h2, precision=hi,
                 preferred_element_type=jnp.float32)
    out_ref[...] = (h3 + b3_ref[...]).astype(out_ref.dtype)           # (2, TB)


def _round_up(n, m):
    return ((n + m - 1) // m) * m


@functools.partial(jax.jit, static_argnames=("tb_max",))
def robot_nn_forward(x, params, *, tb_max=TB_MAX):
    """x: (B, 5) float32  ->  (B, 2) float32.

    params: dict with w1 (64,5), b1 (64,), w2 (32,64), b2 (32,), w3 (2,32),
    b3 (2,) -- PyTorch nn.Linear (out_features, in_features) convention.
    """
    B = x.shape[0]
    # Adaptive batch tile: multiple of 128 (lane width), no bigger than needed,
    # capped so the per-step VMEM footprint stays well inside scoped VMEM on
    # v5e (raised to 32 MiB below) / v6e (32 MiB default) / v7x (32 of 64 MiB).
    tb = min(_round_up(B, 128), tb_max)
    n_tiles = pl.cdiv(B, tb)

    w1, b1 = params["w1"], params["b1"].reshape(H1, 1)
    w2, b2 = params["w2"], params["b2"].reshape(H2, 1)
    w3, b3 = params["w3"], params["b3"].reshape(OUT_F, 1)

    out_t = pl.pallas_call(
        robot_nn_kernel,
        out_shape=jax.ShapeDtypeStruct((OUT_F, B), jnp.float32),
        grid=(n_tiles,),
        in_specs=[
            # x streams in its native (B, 5) layout; each (tb, 5) block is a
            # contiguous chunk of HBM.  The last block may be partial.
            pl.BlockSpec((tb, IN_F), lambda i: (i, 0)),
            # Weights / biases: constant index_map -> stay resident in VMEM.
            pl.BlockSpec((H1, IN_F), lambda i: (0, 0)),
            pl.BlockSpec((H1, 1), lambda i: (0, 0)),
            pl.BlockSpec((H2, H1), lambda i: (0, 0)),
            pl.BlockSpec((H2, 1), lambda i: (0, 0)),
            pl.BlockSpec((OUT_F, H2), lambda i: (0, 0)),
            pl.BlockSpec((OUT_F, 1), lambda i: (0, 0)),
        ],
        # Lane-dense (2, tb) output blocks; out-of-range columns of a partial
        # last block are discarded by Pallas.
        out_specs=pl.BlockSpec((OUT_F, tb), lambda i: (0, i)),
        compiler_params=pltpu.CompilerParams(
            dimension_semantics=(pltpu.PARALLEL,),
            vmem_limit_bytes=32 * 1024 * 1024),
    )(x, w1, b1, w2, b2, w3, b3)

    # Tiny (2, B) -> (B, 2) transpose to match the PyTorch output convention.
    return out_t.T


def init_params(key):
    """Deterministic init mimicking PyTorch nn.Linear defaults:
    W, b ~ U(-1/sqrt(fan_in), 1/sqrt(fan_in)); W stored as (out, in)."""
    dims = [(IN_F, H1), (H1, H2), (H2, OUT_F)]
    params = {}
    for idx, (fan_in, fan_out) in enumerate(dims, start=1):
        key, kw, kb = jax.random.split(key, 3)
        bound = 1.0 / jnp.sqrt(float(fan_in))
        params[f"w{idx}"] = jax.random.uniform(
            kw, (fan_out, fan_in), jnp.float32, -bound, bound)
        params[f"b{idx}"] = jax.random.uniform(
            kb, (fan_out,), jnp.float32, -bound, bound)
    return params


def reference_forward(x, params):
    hi = jax.lax.Precision.HIGHEST
    h1 = jnp.maximum(jnp.dot(x, params["w1"].T, precision=hi) + params["b1"], 0.0)
    h2 = jnp.maximum(jnp.dot(h1, params["w2"].T, precision=hi) + params["b2"], 0.0)
    return jnp.dot(h2, params["w3"].T, precision=hi) + params["b3"]


if __name__ == "__main__":
    key = jax.random.PRNGKey(0)
    key, kp = jax.random.split(key)
    params = init_params(kp)

    def check(B, kx, **kw):
        x = jax.random.normal(kx, (B, IN_F), jnp.float32)
        out = jax.block_until_ready(robot_nn_forward(x, params, **kw))
        ref = reference_forward(x, params)
        assert out.shape == (B, OUT_F), out.shape
        assert jnp.allclose(out, ref, atol=1e-5, rtol=1e-5), (
            f"mismatch vs reference (B={B}, kw={kw}), "
            f"max_abs_err={float(jnp.max(jnp.abs(out - ref)))}")

    key, k1, k2, k3 = jax.random.split(key, 4)
    check(8, k1)                 # tiny batch: single partial tile (tb=128)
    check(1000, k2)              # non-multiple-of-128 batch, single tile (tb=1024)
    check(1000, k3, tb_max=256)  # multi-tile grid (4 tiles) + partial last tile

    print("KERNEL_OK")
</pallas_src>

<mosaic_0001>
module attributes {stable_mosaic.version = 11 : i64} {
  func.func @robot_nn_kernel(%arg0: i32, %arg1: memref<128x5xf32, #tpu.memory_space<vmem>>, %arg2: memref<64x5xf32, #tpu.memory_space<vmem>>, %arg3: memref<64x1xf32, #tpu.memory_space<vmem>>, %arg4: memref<32x64xf32, #tpu.memory_space<vmem>>, %arg5: memref<32x1xf32, #tpu.memory_space<vmem>>, %arg6: memref<2x32xf32, #tpu.memory_space<vmem>>, %arg7: memref<2x1xf32, #tpu.memory_space<vmem>>, %arg8: memref<2x128xf32, #tpu.memory_space<vmem>>) attributes {dimension_semantics = [#tpu.dimension_semantics<parallel>], iteration_bounds = array<i64: 1>, scalar_prefetch = 0 : i64, scratch_operands = 0 : i64, tpu.core_type = #tpu.core_type<tc>, window_params = [{transform_indices = @transform_0, window_bounds = array<i64: 128, 5>}, {pipeline_mode = #tpu.pipeline_mode<synchronous>, transform_indices = @transform_1, window_bounds = array<i64: 64, 5>}, {pipeline_mode = #tpu.pipeline_mode<synchronous>, transform_indices = @transform_2, window_bounds = array<i64: 64, 1>}, {pipeline_mode = #tpu.pipeline_mode<synchronous>, transform_indices = @transform_3, window_bounds = array<i64: 32, 64>}, {pipeline_mode = #tpu.pipeline_mode<synchronous>, transform_indices = @transform_4, window_bounds = array<i64: 32, 1>}, {pipeline_mode = #tpu.pipeline_mode<synchronous>, transform_indices = @transform_5, window_bounds = array<i64: 2, 32>}, {pipeline_mode = #tpu.pipeline_mode<synchronous>, transform_indices = @transform_6, window_bounds = array<i64: 2, 1>}, {transform_indices = @transform_7, window_bounds = array<i64: 2, 128>}]} {
    %c0 = arith.constant 0 : index
    %c0_0 = arith.constant 0 : index
    %0 = vector.load %arg1[%c0, %c0_0] : memref<128x5xf32, #tpu.memory_space<vmem>>, vector<128x5xf32>
    %c0_1 = arith.constant 0 : index
    %c0_2 = arith.constant 0 : index
    %1 = vector.load %arg2[%c0_1, %c0_2] : memref<64x5xf32, #tpu.memory_space<vmem>>, vector<64x5xf32>
    %cst = arith.constant dense<0.000000e+00> : vector<64x128xf32>
    %2 = tpu.matmul %1, %0, %cst {dimension_numbers = #tpu.dot_dimension_numbers<[1], [1], [0], [0], [0, 0, 1, 0], [], []>, precision = #tpu.contract_precision<fp32>} : vector<64x5xf32>, vector<128x5xf32>, vector<64x128xf32> -> vector<64x128xf32>
    %c0_3 = arith.constant 0 : index
    %c0_4 = arith.constant 0 : index
    %3 = vector.load %arg3[%c0_3, %c0_4] : memref<64x1xf32, #tpu.memory_space<vmem>>, vector<64x1xf32>
    %4 = vector.broadcast %3 : vector<64x1xf32> to vector<64x128xf32>
    %5 = arith.addf %2, %4 : vector<64x128xf32>
    %cst_5 = arith.constant 0.000000e+00 : f32
    %6 = vector.broadcast %cst_5 : f32 to vector<64x128xf32>
    %7 = arith.maximumf %5, %6 : vector<64x128xf32>
    %c0_6 = arith.constant 0 : index
    %c0_7 = arith.constant 0 : index
    %8 = vector.load %arg4[%c0_6, %c0_7] : memref<32x64xf32, #tpu.memory_space<vmem>>, vector<32x64xf32>
    %cst_8 = arith.constant dense<0.000000e+00> : vector<32x128xf32>
    %9 = tpu.matmul %8, %7, %cst_8 {dimension_numbers = #tpu.dot_dimension_numbers<[1], [0], [0], [1], [0, 0, 1, 1], [], []>, precision = #tpu.contract_precision<fp32>} : vector<32x64xf32>, vector<64x128xf32>, vector<32x128xf32> -> vector<32x128xf32>
    %c0_9 = arith.constant 0 : index
    %c0_10 = arith.constant 0 : index
    %10 = vector.load %arg5[%c0_9, %c0_10] : memref<32x1xf32, #tpu.memory_space<vmem>>, vector<32x1xf32>
    %11 = vector.broadcast %10 : vector<32x1xf32> to vector<32x128xf32>
    %12 = arith.addf %9, %11 : vector<32x128xf32>
    %cst_11 = arith.constant 0.000000e+00 : f32
    %13 = vector.broadcast %cst_11 : f32 to vector<32x128xf32>
    %14 = arith.maximumf %12, %13 : vector<32x128xf32>
    %c0_12 = arith.constant 0 : index
    %c0_13 = arith.constant 0 : index
    %15 = vector.load %arg6[%c0_12, %c0_13] : memref<2x32xf32, #tpu.memory_space<vmem>>, vector<2x32xf32>
    %cst_14 = arith.constant dense<0.000000e+00> : vector<2x128xf32>
    %16 = tpu.matmul %15, %14, %cst_14 {dimension_numbers = #tpu.dot_dimension_numbers<[1], [0], [0], [1], [0, 0, 1, 1], [], []>, precision = #tpu.contract_precision<fp32>} : vector<2x32xf32>, vector<32x128xf32>, vector<2x128xf32> -> vector<2x128xf32>
    %c0_15 = arith.constant 0 : index
    %c0_16 = arith.constant 0 : index
    %17 = vector.load %arg7[%c0_15, %c0_16] : memref<2x1xf32, #tpu.memory_space<vmem>>, vector<2x1xf32>
    %18 = vector.broadcast %17 : vector<2x1xf32> to vector<2x128xf32>
    %19 = arith.addf %16, %18 : vector<2x128xf32>
    %c0_17 = arith.constant 0 : index
    %c0_18 = arith.constant 0 : index
    %20 = vector.load %arg8[%c0_17, %c0_18] : memref<2x128xf32, #tpu.memory_space<vmem>>, vector<2x128xf32>
    tpu.vector_store %arg8[%c0_17, %c0_18], %19 {strides = array<i32>} : memref<2x128xf32, #tpu.memory_space<vmem>>, vector<2x128xf32>,
    return
  }
  func.func @transform_0(%arg0: i32) -> (i32, i32) {
    %c0_i32 = arith.constant 0 : i32
    %c0_i32_0 = arith.constant 0 : i32
    return %arg0, %c0_i32 : i32, i32
  }
  func.func @transform_1(%arg0: i32) -> (i32, i32) {
    %c0_i32 = arith.constant 0 : i32
    %c0_i32_0 = arith.constant 0 : i32
    %c0_i32_1 = arith.constant 0 : i32
    return %c0_i32, %c0_i32_0 : i32, i32
  }
  func.func @transform_2(%arg0: i32) -> (i32, i32) {
    %c0_i32 = arith.constant 0 : i32
    %c0_i32_0 = arith.constant 0 : i32
    %c0_i32_1 = arith.constant 0 : i32
    return %c0_i32, %c0_i32_0 : i32, i32
  }
  func.func @transform_3(%arg0: i32) -> (i32, i32) {
    %c0_i32 = arith.constant 0 : i32
    %c0_i32_0 = arith.constant 0 : i32
    %c0_i32_1 = arith.constant 0 : i32
    return %c0_i32, %c0_i32_0 : i32, i32
  }
  func.func @transform_4(%arg0: i32) -> (i32, i32) {
    %c0_i32 = arith.constant 0 : i32
    %c0_i32_0 = arith.constant 0 : i32
    %c0_i32_1 = arith.constant 0 : i32
    return %c0_i32, %c0_i32_0 : i32, i32
  }
  func.func @transform_5(%arg0: i32) -> (i32, i32) {
    %c0_i32 = arith.constant 0 : i32
    %c0_i32_0 = arith.constant 0 : i32
    %c0_i32_1 = arith.constant 0 : i32
    return %c0_i32, %c0_i32_0 : i32, i32
  }
  func.func @transform_6(%arg0: i32) -> (i32, i32) {
    %c0_i32 = arith.constant 0 : i32
    %c0_i32_0 = arith.constant 0 : i32
    %c0_i32_1 = arith.constant 0 : i32
    return %c0_i32, %c0_i32_0 : i32, i32
  }
  func.func @transform_7(%arg0: i32) -> (i32, i32) {
    %c0_i32 = arith.constant 0 : i32
    %c0_i32_0 = arith.constant 0 : i32
    return %c0_i32, %arg0 : i32, i32
  }
}

</mosaic_0001>

<bundles_post_ra>
// kernel: robot_nn_forward.1
= control target key start
LH: loop header
LB: loop body
LE: loop exit
PB: predicated region body
PF: predicated region fallthrough
CT: control target
= control target key end

     0   :  { %vm99_vm0 = vcmask 39936   ;;  %s1977_s0 = inlined_call_operand.vmem [shape: f32[8,5], index: 0, kind: input, shape index: {}]   ;;  %s1978_s1 = inlined_call_operand.vmem [shape: f32[64,5], index: 1, kind: input, shape index: {}]   ;;  %s1979_s2 = inlined_call_operand.vmem [shape: f32[64,1], index: 2, kind: input, shape index: {}]   ;;  %s1980_s3 = inlined_call_operand.vmem [shape: f32[32,64], index: 3, kind: input, shape index: {}]   ;;  %s1981_s4 = inlined_call_operand.vmem [shape: f32[32,1], index: 4, kind: input, shape index: {}]   ;;  %s1982_s5 = inlined_call_operand.vmem [shape: f32[2,32], index: 5, kind: input, shape index: {}]   ;;  %s1983_s6 = inlined_call_operand.vmem [shape: f32[2,1], index: 6, kind: input, shape index: {}]   ;;  %s1984_s7 = inlined_call_operand.hbm [shape: f32[2,8], index: 7, kind: output, shape index: {}]  }
   0x1   :  { %v42_v0 = vld [vmem:[%s1977_s0 + $0x78] sm:$0xff]  ;;  %v41_v1 = vld [vmem:[%s1977_s0 + $0x70] sm:$0xff]  ;;  %v40_v2 = vld [vmem:[%s1977_s0 + $0x68] sm:$0xff] }
   0x2   :  { %v170_v3 = vsel %vm99_vm0, %v42_v0, 0  ;;  %v167_v4 = vsel %vm99_vm0, %v41_v1, 0  ;;  %v164_v5 = vsel %vm99_vm0, %v40_v2, 0  ;;  %v39_v6 = vld [vmem:[%s1977_s0 + $0x60] sm:$0xff]  ;;  %v38_v7 = vld [vmem:[%s1977_s0 + $0x58] sm:$0xff]  ;;  %v37_v17 = vld [vmem:[%s1977_s0 + $0x50] sm:$0xff] }
   0x3   :  { %v1417_v8 = vand.u32 4294901760, %v170_v3  ;;  %v1419_v9 = vand.u32 4294901760, %v167_v4  ;;  %v1421_v10 = vand.u32 4294901760, %v164_v5  ;;  %v161_v11 = vsel %vm99_vm0, %v39_v6, 0 }
   0x4   :  { %v1424_v12 = vand.u32 4294901760, %v161_v11  ;;  %v158_v16 = vsel %vm99_vm0, %v38_v7, 0 }
   0x5   :  { %173 = vmatpush.xpose.msra.mxu0 %v1417_v8  ;;  %v1428_v13 = vsub.f32 %v170_v3, %v1417_v8  ;;  %488 = vmatpush.xpose.msra.mxu3 %v1417_v8  ;;  %v1432_v14 = vsub.f32 %v167_v4, %v1419_v9  ;;  %v1435_v15 = vsub.f32 %v164_v5, %v1421_v10 }
   0x6   :  { %12 = vsyncpa [#allocation3], 0  ;;  %v1444_v20 = vand.u32 4294901760, %v158_v16  ;;  %v155_v21 = vsel %vm99_vm0, %v37_v17, 0  ;;  %v1457_v25 = vsub.f32 %v161_v11, %v1424_v12  ;;  %v36_v26 = vld [vmem:[%s1977_s0 + $0x48] sm:$0xff]  ;;  %v35_v34 = vld [vmem:[%s1977_s0 + $0x40] sm:$0xff] }
   0x7   :  { %400 = vmatpush.xpose.msra.mxu2 %v1428_v13  ;;  %v271_v18 = vand.u32 4294901760, %v1428_v13  ;;  %v277_v19 = vand.u32 4294901760, %v1432_v14  ;;  %v283_v24 = vand.u32 4294901760, %v1435_v15  ;;  %v1463_v28 = vand.u32 4294901760, %v155_v21  ;;  %v34_v41 = vld [vmem:[%s1977_s0 + $0x38] sm:$0xff]  ;;  %v33_v48 = vld [vmem:[%s1977_s0 + $0x30] sm:$0xff] }
   0x8   :  { %v152_v29 = vsel %vm99_vm0, %v36_v26, 0  ;;  %v289_v32 = vand.u32 4294901760, %v1457_v25  ;;  %v1472_v33 = vsub.f32 %v158_v16, %v1444_v20  ;;  %v149_v40 = vsel %vm99_vm0, %v35_v34, 0  ;;  %v32_v54 = vld [vmem:[%s1977_s0 + $0x28] sm:$0xff]  ;;  %v31_v62 = vld [vmem:[%s1977_s0 + $0x20] sm:$0xff]  ;;  %v30_v5 = vld [vmem:[%s1977_s0 + $0x18] sm:$0xff] }
   0x9   :  { %175 = vmatpush.xpose.msra.mxu0 %v1419_v9  ;;  %v272_v22 = vsub.f32 %v1428_v13, %v271_v18  ;;  %490 = vmatpush.xpose.msra.mxu3 %v1419_v9  ;;  %v278_v23 = vsub.f32 %v1432_v14, %v277_v19  ;;  %v284_v31 = vsub.f32 %v1435_v15, %v283_v24  ;;  %v1479_v35 = vand.u32 4294901760, %v152_v29  ;;  %v56_v16 = vld [vmem:[%s1979_s2 + $0x28] sm:$0xff]  ;;  %v29_v26 = vld [vmem:[%s1977_s0 + $0x10] sm:$0xff]  ;;  %s1317_s12 = sshll.u32 %s1984_s7, 4  ;;  %s1318_s12 = int_to_ptr.hbm [resolvable:$true] %s1317_s12 }
   0xa   :  { %v290_v37 = vsub.f32 %v1457_v25, %v289_v32  ;;  %v295_v38 = vand.u32 4294901760, %v1472_v33  ;;  %v1487_v39 = vsub.f32 %v155_v21, %v1463_v28  ;;  %v1502_v45 = vand.u32 4294901760, %v149_v40 }
   0xb   :  { %v273_v27 = vand.u32 4294901760, %v272_v22  ;;  %403 = vmatpush.xpose.msra.mxu2 %v1432_v14  ;;  %v279_v30 = vand.u32 4294901760, %v278_v23  ;;  %v285_v36 = vand.u32 4294901760, %v284_v31  ;;  %v1496_v42 = vsub.f32 %v152_v29, %v1479_v35 }
   0xc   :  { %v291_v43 = vand.u32 4294901760, %v290_v37  ;;  %v296_v44 = vsub.f32 %v1472_v33, %v295_v38  ;;  %v301_v46 = vand.u32 4294901760, %v1487_v39  ;;  %v146_v47 = vsel %vm99_vm0, %v34_v41, 0  ;;  %v43_v37 = vld [vmem:[%s1978_s1] sm:$0xff] }
   0xd   :  { %177 = vmatpush.xpose.msra.mxu0 %v1421_v10  ;;  %274 = vmatpush.xpose.msra.mxu1 %v273_v27  ;;  %v307_v49 = vand.u32 4294901760, %v1496_v42  ;;  %v1516_v52 = vand.u32 4294901760, %v146_v47  ;;  %v1519_v53 = vsub.f32 %v149_v40, %v1502_v45  ;;  %v143_v55 = vsel %vm99_vm0, %v33_v48, 0  ;;  %v28_v40 = vld [vmem:[%s1977_s0 + $0x8] sm:$0xff] }
   0xe   :  { %492 = vmatpush.xpose.msra.mxu3 %v1421_v10  ;;  %v297_v50 = vand.u32 4294901760, %v296_v44  ;;  %v302_v51 = vsub.f32 %v1487_v39, %v301_v46  ;;  %v140_v57 = vsel %vm99_vm0, %v32_v54, 0  ;;  %v1532_v59 = vand.u32 4294901760, %v143_v55  ;;  %v58_v44 = vld [vmem:[%s1979_s2 + $0x38] sm:$0xff] }
   0xf   :  { %406 = vmatpush.xpose.msra.mxu2 %v1435_v15  ;;  %v308_v56 = vsub.f32 %v1496_v42, %v307_v49  ;;  %v313_v60 = vand.u32 4294901760, %v1519_v53  ;;  %v1536_v61 = vsub.f32 %v146_v47, %v1516_v52  ;;  %v1543_v0 = vand.u32 4294901760, %v140_v57  ;;  %v55_v47 = vld [vmem:[%s1979_s2 + $0x20] sm:$0xff] }
  0x10   :  { %v303_v58 = vand.u32 4294901760, %v302_v51  ;;  %v137_v1 = vsel %vm99_vm0, %v31_v62, 0  ;;  %v1552_v4 = vsub.f32 %v143_v55, %v1532_v59  ;;  %v1357_v6 = vmov 0  }
  0x11   :  { %179 = vmatpush.xpose.msra.mxu0 %v1424_v12  ;;  %280 = vmatpush.xpose.msra.mxu1 %v279_v30  ;;  %v309_v63 = vand.u32 4294901760, %v308_v56  ;;  %v314_v2 = vsub.f32 %v1519_v53, %v313_v60  ;;  %v319_v3 = vand.u32 4294901760, %v1536_v61  ;;  %v1559_v7 = vand.u32 4294901760, %v137_v1  ;;  %v27_v56 = vld [vmem:[%s1977_s0] sm:$0xff] }
  0x12   :  { %494 = vmatpush.xpose.msra.mxu3 %v1424_v12  ;;  %1329 = vset.pattern.permute.xlu1 %v1357_v6  ;;  %v1562_v11 = vsub.f32 %v140_v57, %v1543_v0  ;;  %v325_v22 = vand.u32 4294901760, %v1552_v4  ;;  %v134_v23 = vsel %vm99_vm0, %v30_v5, 0  ;;  %v101_v54 = vsel %vm99_vm0, %v43_v37, 0 }
  0x13   :  { %409 = vmatpush.xpose.msra.mxu2 %v1457_v25  ;;  %1328 = vset.pattern.permute.xlu0 %v1357_v6  ;;  %v315_v17 = vand.u32 4294901760, %v314_v2  ;;  %v320_v21 = vsub.f32 %v1536_v61, %v319_v3  ;;  %v1578_v27 = vand.u32 4294901760, %v134_v23  ;;  %v1581_v29 = vsub.f32 %v137_v1, %v1559_v7 }
  0x14   :  { %1330 = vset.pattern.permute.xlu2 %v1357_v6  ;;  %86 = vperm.xlu1 %1329, %v56_v16   ;;  %v326_v31 = vsub.f32 %v1552_v4, %v325_v22  ;;  %v331_v34 = vand.u32 4294901760, %v1562_v11  ;;  %v128_v55 = vsel %vm99_vm0, %v28_v40, 0  ;;  %v1624_v62 = vand.u32 4294901760, %v101_v54  ;;  %v44_v6 = vld [vmem:[%s1978_s1 + $0x8] sm:$0xff] }
  0x15   :  { %181 = vmatpush.xpose.msra.mxu0 %v1444_v20  ;;  %286 = vmatpush.xpose.msra.mxu1 %v285_v36  ;;  %v321_v30 = vand.u32 4294901760, %v320_v21  ;;  %v131_v36 = vsel %vm99_vm0, %v29_v26, 0  ;;  %v337_v41 = vand.u32 4294901760, %v1581_v29  ;;  %v1627_v1 = vand.u32 4294901760, %v128_v55  ;;  %v51_v26 = vld [vmem:[%s1979_s2] sm:$0xff] }
  0x16   :  { %496 = vmatpush.xpose.msra.mxu3 %v1444_v20  ;;  %v327_v48 = vand.u32 4294901760, %v326_v31  ;;  %v1611_v51 = vand.u32 4294901760, %v131_v36  ;;  %96 = vperm.xlu0 %1328, %v58_v44   ;;  %v125_v5 = vsel %vm99_vm0, %v27_v56, 0  ;;  %v205_v21 = vsub.f32 %v101_v54, %v1624_v62 }
  0x17   :  { %412 = vmatpush.xpose.msra.mxu2 %v1472_v33  ;;  %v338_v57 = vsub.f32 %v1581_v29, %v337_v41  ;;  %v104_v37 = vsel %vm99_vm0, %v44_v6, 0  ;;  %vm766_vm1 = vcmask 523264   ;;  %vm1120_vm2 = vcmask 261120  }
  0x18   :  { %v1630_v2 = vsub.f32 %v131_v36, %v1611_v51  ;;  %v1653_v36 = vsub.f32 %v128_v55, %v1627_v1  ;;  %v206_v40 = vand.u32 4294901760, %v205_v21  ;;  %v1658_v44 = vand.u32 4294901760, %v104_v37  ;;  %v45_v55 = vld [vmem:[%s1978_s1 + $0x10] sm:$0xff] }
  0x19   :  { %183 = vmatpush.xpose.msra.mxu0 %v1463_v28  ;;  %292 = vmatpush.xpose.msra.mxu1 %v291_v43  ;;  %v1599_v43 = vsub.f32 %v134_v23, %v1578_v27  ;;  %v339_v16 = vand.u32 4294901760, %v338_v57  ;;  %v57_v23 = vld [vmem:[%s1979_s2 + $0x30] sm:$0xff] }
  0x1a   :  { %498 = vmatpush.xpose.msra.mxu3 %v1463_v28  ;;  %v349_v31 = vand.u32 4294901760, %v1630_v2  ;;  %v207_v56 = vsub.f32 %v205_v21, %v206_v40  ;;  %v213_v57 = vsub.f32 %v104_v37, %v1658_v44 }
  0x1b   :  { %415 = vmatpush.xpose.msra.mxu2 %v1487_v39 }
  0x1c   :  { %81 = vperm.xlu1 %1329, %v55_v47  }
  0x1d   :  { %185 = vmatpush.xpose.msra.mxu0 %v1479_v35  ;;  %298 = vmatpush.xpose.msra.mxu1 %v297_v50  ;;  %v332_v50 = vsub.f32 %v1562_v11, %v331_v34 }
  0x1e   :  { %500 = vmatpush.xpose.msra.mxu3 %v1479_v35  ;;  %91 = vperm.xlu0 %1328, %v57_v23   ;;  %v208_v23 = vand.u32 4294901760, %v207_v56 }
  0x1f   :  { %418 = vmatpush.xpose.msra.mxu2 %v1496_v42 }
  0x21   :  { %187 = vmatpush.xpose.msra.mxu0 %v1502_v45  ;;  %304 = vmatpush.xpose.msra.mxu1 %v303_v58  ;;  %v343_v58 = vand.u32 4294901760, %v1599_v43 }
  0x22   :  { %502 = vmatpush.xpose.msra.mxu3 %v1502_v45 }
  0x23   :  { %421 = vmatpush.xpose.msra.mxu2 %v1519_v53 }
  0x24   :  { %61 = vperm.xlu1 %1329, %v51_v26   ;;  %v214_v26 = vand.u32 4294901760, %v213_v57 }
  0x25   :  { %189 = vmatpush.xpose.msra.mxu0 %v1516_v52  ;;  %310 = vmatpush.xpose.msra.mxu1 %v309_v63  ;;  %v333_v63 = vand.u32 4294901760, %v332_v50  ;;  %v355_v50 = vand.u32 4294901760, %v1653_v36 }
  0x26   :  { %504 = vmatpush.xpose.msra.mxu3 %v1516_v52  ;;  %v215_v56 = vsub.f32 %v213_v57, %v214_v26 }
  0x27   :  { %424 = vmatpush.xpose.msra.mxu2 %v1536_v61  ;;  %v356_v6 = vsub.f32 %v1653_v36, %v355_v50 }
  0x28   :  { %v216_v13 = vand.u32 4294901760, %v215_v56 }
  0x29   :  { %191 = vmatpush.xpose.msra.mxu0 %v1532_v59  ;;  %316 = vmatpush.xpose.msra.mxu1 %v315_v17  ;;  %v344_v17 = vsub.f32 %v1599_v43, %v343_v58 }
  0x2a   :  { %506 = vmatpush.xpose.msra.mxu3 %v1532_v59 }
  0x2b   :  { %427 = vmatpush.xpose.msra.mxu2 %v1552_v4  ;;  %v345_v47 = vand.u32 4294901760, %v344_v17  ;;  %v107_v17 = vsel %vm99_vm0, %v45_v55, 0  ;;  %v46_v55 = vld [vmem:[%s1978_s1 + $0x18] sm:$0xff] }
  0x2c   :  { %v1685_v37 = vand.u32 4294901760, %v107_v17 }
  0x2d   :  { %193 = vmatpush.xpose.msra.mxu0 %v1543_v0  ;;  %322 = vmatpush.xpose.msra.mxu1 %v321_v30  ;;  %v1649_v30 = vand.u32 4294901760, %v125_v5 }
  0x2e   :  { %508 = vmatpush.xpose.msra.mxu3 %v1543_v0 }
  0x2f   :  { %430 = vmatpush.xpose.msra.mxu2 %v1562_v11  ;;  %v1666_v54 = vsub.f32 %v125_v5, %v1649_v30 }
  0x31   :  { %195 = vmatpush.xpose.msra.mxu0 %v1559_v7  ;;  %328 = vmatpush.xpose.msra.mxu1 %v327_v48  ;;  %v350_v48 = vsub.f32 %v1630_v2, %v349_v31 }
  0x32   :  { %510 = vmatpush.xpose.msra.mxu3 %v1559_v7 }
  0x33   :  { %433 = vmatpush.xpose.msra.mxu2 %v1581_v29  ;;  %v351_v5 = vand.u32 4294901760, %v350_v48  ;;  %v745_v29 = vld [vmem:[%s1981_s4 + $0x18] sm:$0xff] }
  0x35   :  { %197 = vmatpush.xpose.msra.mxu0 %v1578_v27  ;;  %334 = vmatpush.xpose.msra.mxu1 %v333_v63  ;;  %v52_v63 = vld [vmem:[%s1979_s2 + $0x8] sm:$0xff] }
  0x36   :  { %512 = vmatpush.xpose.msra.mxu3 %v1578_v27  ;;  %66 = vperm.xlu0 %1328, %v52_v63   ;;  %v221_v63 = vsub.f32 %v107_v17, %v1685_v37  ;;  %v48_v17 = vld [vmem:[%s1978_s1 + $0x28] sm:$0xff] }
  0x37   :  { %436 = vmatpush.xpose.msra.mxu2 %v1599_v43  ;;  %v116_v33 = vsel %vm99_vm0, %v48_v17, 0  ;;  %v742_v43 = vld [vmem:[%s1981_s4] sm:$0xff] }
  0x39   :  { %199 = vmatpush.xpose.msra.mxu0 %v1611_v51  ;;  %340 = vmatpush.xpose.msra.mxu1 %v339_v16  ;;  %v1985_v16 = vand.u32 4294901760, %v1666_v54 }
  0x3a   :  { %514 = vmatpush.xpose.msra.mxu3 %v1611_v51 }
  0x3b   :  { %439 = vmatpush.xpose.msra.mxu2 %v1630_v2  ;;  %v362_v48 = vsub.f32 %v1666_v54, %v1985_v16 }
  0x3d   :  { %201 = vmatpush.xpose.msra.mxu0 %v1627_v1  ;;  %346 = vmatpush.xpose.msra.mxu1 %v345_v47  ;;  %v357_v47 = vand.u32 4294901760, %v356_v6  ;;  %v110_v6 = vsel %vm99_vm0, %v46_v55, 0 }
  0x3e   :  { %516 = vmatpush.xpose.msra.mxu3 %v1627_v1  ;;  %v1702_v16 = vand.u32 4294901760, %v110_v6 }
  0x3f   :  { %442 = vmatpush.xpose.msra.mxu2 %v1653_v36 }
  0x40   :  { %v229_v14 = vsub.f32 %v110_v6, %v1702_v16 }
  0x41   :  { %203 = vmatpush.xpose.msra.mxu0 %v1649_v30  ;;  %352 = vmatpush.xpose.msra.mxu1 %v351_v5  ;;  %v363_v5 = vand.u32 4294901760, %v362_v48 }
  0x42   :  { %518 = vmatpush.xpose.msra.mxu3 %v1649_v30  ;;  %v230_v15 = vand.u32 4294901760, %v229_v14 }
  0x43   :  { %445 = vmatpush.xpose.msra.mxu2 %v1666_v54 }
  0x44   :  { %209 = vmatmul.f32.vlgmr.msra.gmra.mxu0 %v208_v23  ;;  %v231_v25 = vsub.f32 %v229_v14, %v230_v15  ;;  %v49_v23 = vld [vmem:[%s1978_s1 + $0x30] sm:$0xff] }
  0x45   :  { %571 = vmatpush.xpose.msrb.mxu0 %v271_v18  ;;  %358 = vmatpush.xpose.msra.mxu1 %v357_v47  ;;  %v222_v18 = vand.u32 4294901760, %v221_v63  ;;  %v119_v42 = vsel %vm99_vm0, %v49_v23, 0  ;;  %v50_v47 = vld [vmem:[%s1978_s1 + $0x38] sm:$0xff] }
  0x46   :  { %522 = vmatmul.f32.vlgmr.msra.gmra.mxu3 %v206_v40  ;;  %448 = vmatmul.f32.vlgmr.msra.gmra.mxu2 %v205_v21  ;;  %v47_v40 = vld [vmem:[%s1978_s1 + $0x20] sm:$0xff] }
  0x47   :  { %v223_v21 = vsub.f32 %v221_v63, %v222_v18 }
  0x49   :  { %575 = vmatpush.xpose.msrb.mxu0 %v277_v19  ;;  %364 = vmatpush.xpose.msra.mxu1 %v363_v5  ;;  %v113_v19 = vsel %vm99_vm0, %v47_v40, 0 }
  0x4c   :  { %217 = vmatmul.f32.gmra.mxu0 %v216_v13  ;;  %366 = vmatmul.f32.vlgmr.msra.gmra.mxu1 %v1624_v62 }
  0x4d   :  { %579 = vmatpush.xpose.msrb.mxu0 %v283_v24  ;;  %666 = vmatpush.xpose.msrb.mxu1 %v1417_v8  ;;  %v224_v8 = vand.u32 4294901760, %v223_v21  ;;  %v1716_v24 = vand.u32 4294901760, %v113_v19 }
  0x4e   :  { %528 = vmatmul.f32.gmra.mxu3 %v214_v26  ;;  %453 = vmatmul.f32.gmra.mxu2 %v213_v57  ;;  %v1733_v57 = vand.u32 4294901760, %v116_v33  ;;  %v1750_v26 = vand.u32 4294901760, %v119_v42 }
  0x51   :  { %583 = vmatpush.xpose.msrb.mxu0 %v289_v32  ;;  %668 = vmatpush.xpose.msrb.mxu1 %v1419_v9  ;;  %v237_v32 = vsub.f32 %v113_v19, %v1716_v24  ;;  %v54_v9 = vld [vmem:[%s1979_s2 + $0x18] sm:$0xff] }
  0x52   :  { %76 = vperm.xlu2 %1330, %v54_v9  }
  0x54   :  { %225 = vmatmul.f32.gmra.mxu0 %v224_v8  ;;  %370 = vmatmul.f32.gmra.mxu1 %v1658_v44 }
  0x55   :  { %587 = vmatpush.xpose.msrb.mxu0 %v295_v38  ;;  %670 = vmatpush.xpose.msrb.mxu1 %v1421_v10  ;;  %v232_v10 = vand.u32 4294901760, %v231_v25  ;;  %v238_v38 = vand.u32 4294901760, %v237_v32 }
  0x56   :  { %534 = vmatmul.f32.gmra.mxu3 %v222_v18  ;;  %458 = vmatmul.f32.gmra.mxu2 %v221_v63 }
  0x57   :  { %v239_v39 = vsub.f32 %v237_v32, %v238_v38 }
  0x59   :  { %591 = vmatpush.xpose.msrb.mxu0 %v301_v46  ;;  %672 = vmatpush.xpose.msrb.mxu1 %v1424_v12  ;;  %v245_v46 = vsub.f32 %v116_v33, %v1733_v57  ;;  %v53_v12 = vld [vmem:[%s1979_s2 + $0x10] sm:$0xff] }
  0x5a   :  { %71 = vperm.xlu2 %1330, %v53_v12  }
  0x5c   :  { %233 = vmatmul.f32.gmra.mxu0 %v232_v10  ;;  %374 = vmatmul.f32.gmra.mxu1 %v1685_v37 }
  0x5d   :  { %595 = vmatpush.xpose.msrb.mxu0 %v307_v49  ;;  %674 = vmatpush.xpose.msrb.mxu1 %v1444_v20  ;;  %v240_v20 = vand.u32 4294901760, %v239_v39  ;;  %v246_v49 = vand.u32 4294901760, %v245_v46 }
  0x5e   :  { %540 = vmatmul.f32.gmra.mxu3 %v230_v15  ;;  %463 = vmatmul.f32.gmra.mxu2 %v229_v14 }
  0x5f   :  { %v247_v53 = vsub.f32 %v245_v46, %v246_v49 }
  0x61   :  { %599 = vmatpush.xpose.msrb.mxu0 %v313_v60  ;;  %676 = vmatpush.xpose.msrb.mxu1 %v1463_v28  ;;  %v253_v60 = vsub.f32 %v119_v42, %v1750_v26  ;;  %v122_v28 = vsel %vm99_vm0, %v50_v47, 0  ;;  %v248_v61 = vand.u32 4294901760, %v247_v53 }
  0x62   :  { %v1764_v48 = vand.u32 4294901760, %v122_v28  ;;  %763 = vperm.xlu2 %1330, %v745_v29  }
  0x64   :  { %241 = vmatmul.f32.gmra.mxu0 %v240_v20  ;;  %378 = vmatmul.f32.gmra.mxu1 %v1702_v16  ;;  %v261_v55 = vsub.f32 %v122_v28, %v1764_v48 }
  0x65   :  { %603 = vmatpush.xpose.msrb.mxu0 %v319_v3  ;;  %678 = vmatpush.xpose.msrb.mxu1 %v1479_v35  ;;  %v254_v3 = vand.u32 4294901760, %v253_v60 }
  0x66   :  { %546 = vmatmul.f32.gmra.mxu3 %v238_v38  ;;  %468 = vmatmul.f32.gmra.mxu2 %v237_v32  ;;  %v262_v4 = vand.u32 4294901760, %v261_v55 }
  0x67   :  { %v255_v35 = vsub.f32 %v253_v60, %v254_v3 }
  0x69   :  { %607 = vmatpush.xpose.msrb.mxu0 %v325_v22  ;;  %680 = vmatpush.xpose.msrb.mxu1 %v1502_v45  ;;  %v256_v45 = vand.u32 4294901760, %v255_v35  ;;  %v743_v22 = vld [vmem:[%s1981_s4 + $0x8] sm:$0xff] }
  0x6a   :  { %753 = vperm.xlu1 %1329, %v743_v22   ;;  %748 = vperm.xlu2 %1330, %v742_v43  }
  0x6c   :  { %249 = vmatmul.f32.gmra.mxu0 %v248_v61  ;;  %382 = vmatmul.f32.gmra.mxu1 %v1716_v24 }
  0x6d   :  { %611 = vmatpush.xpose.msrb.mxu0 %v331_v34  ;;  %682 = vmatpush.xpose.msrb.mxu1 %v1516_v52  ;;  %v263_v52 = vsub.f32 %v261_v55, %v262_v4 }
  0x6e   :  { %552 = vmatmul.f32.gmra.mxu3 %v246_v49  ;;  %473 = vmatmul.f32.gmra.mxu2 %v245_v46 }
  0x6f   :  { %v264_v11 = vand.u32 4294901760, %v263_v52 }
  0x71   :  { %615 = vmatpush.xpose.msrb.mxu0 %v337_v41  ;;  %684 = vmatpush.xpose.msrb.mxu1 %v1532_v59  ;;  %v1986_v59 = vand.u32 4294901760, %v1666_v54 }
  0x74   :  { %257 = vmatmul.f32.gmra.mxu0 %v256_v45  ;;  %386 = vmatmul.f32.gmra.mxu1 %v1733_v57 }
  0x75   :  { %619 = vmatpush.xpose.msrb.mxu0 %v343_v58  ;;  %686 = vmatpush.xpose.msrb.mxu1 %v1543_v0  ;;  %v744_v0 = vld [vmem:[%s1981_s4 + $0x10] sm:$0xff] }
  0x76   :  { %558 = vmatmul.f32.gmra.mxu3 %v254_v3  ;;  %478 = vmatmul.f32.gmra.mxu2 %v253_v60 }
  0x77   :  { %758 = vperm.xlu0 %1328, %v744_v0  }
  0x79   :  { %623 = vmatpush.xpose.msrb.mxu0 %v349_v31  ;;  %688 = vmatpush.xpose.msrb.mxu1 %v1559_v7  ;;  %v1114_v7 = vld [vmem:[%s1983_s6] sm:$0x3] }
  0x7c   :  { %265 = vmatmul.f32.gmra.mxu0 %v264_v11  ;;  %390 = vmatmul.f32.gmra.mxu1 %v1750_v26 }
  0x7d   :  { %627 = vmatpush.xpose.msrb.mxu0 %v355_v50  ;;  %690 = vmatpush.xpose.msrb.mxu1 %v1578_v27 }
  0x7e   :  { %564 = vmatmul.f32.gmra.mxu3 %v262_v4  ;;  %483 = vmatmul.f32.gmra.mxu2 %v261_v55 }
  0x7f   :  { %1117 = vperm.xlu0 %1328, %v1114_v7  }
  0x81   :  { %631 = vmatpush.xpose.msrb.mxu0 %v1986_v59  ;;  %692 = vmatpush.xpose.msrb.mxu1 %v1611_v51 }
  0x84   :  { %394 = vmatmul.f32.gmra.mxu1 %v1764_v48  ;;  %633 = vmatmul.f32.vlgmr.msrb.gmra.mxu0 %v1624_v62 }
  0x85   :  { %694 = vmatpush.xpose.msrb.mxu1 %v1627_v1 }
  0x86   :  { %v87_v27 = vpop.permute.xlu1 %86 }
  0x88   :  { %v1816_v34 = vpop.permute.xlu0 %96 }
  0x89   :  { %696 = vmatpush.xpose.msrb.mxu1 %v1649_v30 }
  0x8c   :  { %637 = vmatmul.f32.gmra.mxu0 %v1658_v44  ;;  %698 = vmatmul.f32.vlgmr.msrb.gmra.mxu1 %v1624_v62 }
  0x8e   :  { %v82_v41 = vpop.permute.xlu1 %81 }
  0x90   :  { %v92_v58 = vpop.permute.xlu0 %91 }
  0x94   :  { %641 = vmatmul.f32.gmra.mxu0 %v1685_v37  ;;  %702 = vmatmul.f32.gmra.mxu1 %v1658_v44 }
  0x96   :  { %v62_v62 = vpop.permute.xlu1 %61 }
  0x9c   :  { %645 = vmatmul.f32.gmra.mxu0 %v1702_v16  ;;  %706 = vmatmul.f32.gmra.mxu1 %v1685_v37 }
  0xa4   :  { %649 = vmatmul.f32.gmra.mxu0 %v1716_v24  ;;  %710 = vmatmul.f32.gmra.mxu1 %v1702_v16 }
  0xa8   :  { %v67_v54 = vpop.permute.xlu0 %66 }
  0xac   :  { %653 = vmatmul.f32.gmra.mxu0 %v1733_v57  ;;  %714 = vmatmul.f32.gmra.mxu1 %v1716_v24  ;;  %v77_v2 = vpop.permute.xlu2 %76 }
  0xb4   :  { %657 = vmatmul.f32.gmra.mxu0 %v1750_v26  ;;  %718 = vmatmul.f32.gmra.mxu1 %v1733_v57  ;;  %v72_v13 = vpop.permute.xlu2 %71 }
  0xbc   :  { %661 = vmatmul.f32.gmra.mxu0 %v1764_v48  ;;  %722 = vmatmul.f32.gmra.mxu1 %v1750_v26 }
  0xc1   :  { %v210_v51 = vpop.f32.mrf.mxu0 }
  0xc2   :  { %v211_v1 = vadd.f32 %v210_v51, %v62_v62 }
  0xc4   :  { %726 = vmatmul.f32.gmra.mxu1 %v1764_v48 }
  0xc9   :  { %v218_v30 = vpop.f32.mrf.mxu0  ;;  %v367_v31 = vpop.f32.mrf.mxu1 }
  0xca   :  { %v368_v36 = vadd.f32 %v367_v31, %v211_v1  ;;  %v449_v44 = vpop.f32.mrf.mxu2  ;;  %v523_v50 = vpop.f32.mrf.mxu3  ;;  %v219_v56 = vadd.f32 %v218_v30, %v67_v54 }
  0xcc   :  { %v450_v16 = vadd.f32 %v449_v44, %v368_v36 }
  0xce   :  { %v524_v37 = vadd.f32 %v523_v50, %v450_v16 }
  0xd1   :  { %v226_v63 = vpop.f32.mrf.mxu0  ;;  %v371_v5 = vpop.f32.mrf.mxu1 }
  0xd2   :  { %v1824_v6 = vadd.f32 %v371_v5, %v219_v56  ;;  %v227_v18 = vadd.f32 %v226_v63, %v72_v13  ;;  %v454_v12 = vpop.f32.mrf.mxu2  ;;  %v529_v20 = vpop.f32.mrf.mxu3 }
  0xd4   :  { %v455_v13 = vadd.f32 %v454_v12, %v1824_v6  ;;  %v738_v6 = vld [vmem:[%s1980_s3] sm:$0xff] }
  0xd9   :  { %v234_v40 = vpop.f32.mrf.mxu0  ;;  %v375_v21 = vpop.f32.mrf.mxu1 }
  0xda   :  { %v376_v14 = vadd.f32 %v375_v21, %v227_v18  ;;  %v235_v19 = vadd.f32 %v234_v40, %v77_v2  ;;  %v459_v53 = vpop.f32.mrf.mxu2  ;;  %v535_v60 = vpop.f32.mrf.mxu3 }
  0xdc   :  { %v460_v16 = vadd.f32 %v459_v53, %v376_v14 }
  0xe1   :  { %v242_v8 = vpop.f32.mrf.mxu0  ;;  %v379_v15 = vpop.f32.mrf.mxu1 }
  0xe2   :  { %v380_v24 = vadd.f32 %v379_v15, %v235_v19  ;;  %v243_v17 = vadd.f32 %v242_v8, %v82_v41  ;;  %v464_v48 = vpop.f32.mrf.mxu2  ;;  %v541_v45 = vpop.f32.mrf.mxu3  ;;  %v536_v15 = vadd.f32 %v535_v60, %v460_v16 }
  0xe4   :  { %v465_v36 = vadd.f32 %v464_v48, %v380_v24 }
  0xe6   :  { %v542_v21 = vadd.f32 %v541_v45, %v465_v36 }
  0xe9   :  { %v250_v25 = vpop.f32.mrf.mxu0  ;;  %v383_v32 = vpop.f32.mrf.mxu1 }
  0xea   :  { %v384_v9 = vadd.f32 %v383_v32, %v243_v17  ;;  %v251_v33 = vadd.f32 %v250_v25, %v87_v27  ;;  %v469_v4 = vpop.f32.mrf.mxu2  ;;  %v547_v59 = vpop.f32.mrf.mxu3 }
  0xec   :  { %v470_v30 = vadd.f32 %v469_v4, %v384_v9  ;;  %v530_v9 = vadd.f32 %v529_v20, %v455_v13 }
  0xf1   :  { %v258_v10 = vpop.f32.mrf.mxu0  ;;  %v387_v38 = vpop.f32.mrf.mxu1 }
  0xf2   :  { %v388_v57 = vadd.f32 %v387_v38, %v251_v33  ;;  %v259_v23 = vadd.f32 %v258_v10, %v92_v58  ;;  %v474_v22 = vpop.f32.mrf.mxu2  ;;  %v553_v27 = vpop.f32.mrf.mxu3 }
  0xf4   :  { %v475_v62 = vadd.f32 %v474_v22, %v388_v57 }
  0xf6   :  { %v554_v44 = vadd.f32 %v553_v27, %v475_v62 }
  0xf9   :  { %v266_v39 = vpop.f32.mrf.mxu0  ;;  %v391_v46 = vpop.f32.mrf.mxu1 }
  0xfa   :  { %v392_v42 = vadd.f32 %v391_v46, %v259_v23  ;;  %v479_v43 = vpop.f32.mrf.mxu2  ;;  %v559_v51 = vpop.f32.mrf.mxu3  ;;  %v267_v1 = vadd.f32 %v266_v39, %v1816_v34 }
  0xfc   :  { %v480_v2 = vadd.f32 %v479_v43, %v392_v42 }
  0xfe   :  { %v560_v50 = vadd.f32 %v559_v51, %v480_v2 }
 0x101   :  { %v395_v49 = vpop.f32.mrf.mxu1  ;;  %v634_v26 = vpop.f32.mrf.mxu0 }
 0x102   :  { %v635_v47 = vadd.f32 %v634_v26, %v524_v37  ;;  %v396_v54 = vadd.f32 %v395_v49, %v267_v1  ;;  %v548_v37 = vadd.f32 %v547_v59, %v470_v30  ;;  %v484_v56 = vpop.f32.mrf.mxu2  ;;  %v565_v17 = vpop.f32.mrf.mxu3  ;;  %v768_v26 = vsel %vm766_vm1, %v738_v6, 0  ;;  %v739_v59 = vld [vmem:[%s1980_s3 + $0x8] sm:$0xff] }
 0x103   :  { %v1843_v4 = vand.u32 4294901760, %v768_v26  ;;  %v771_v43 = vsel %vm766_vm1, %v739_v59, 0 }
 0x104   :  { %v485_v19 = vadd.f32 %v484_v56, %v396_v54 }
 0x106   :  { %v566_v10 = vadd.f32 %v565_v17, %v485_v19 }
 0x109   :  { %v638_v28 = vpop.f32.mrf.mxu0  ;;  %v699_v61 = vpop.f32.mrf.mxu1 }
 0x10a   :  { %v1826_v3 = vadd.f32 %v699_v61, %v635_v47  ;;  %v639_v46 = vadd.f32 %v638_v28, %v530_v9 }
 0x111   :  { %v642_v35 = vpop.f32.mrf.mxu0  ;;  %v703_v55 = vpop.f32.mrf.mxu1 }
 0x112   :  { %v643_v33 = vadd.f32 %v642_v35, %v536_v15  ;;  %v704_v20 = vadd.f32 %v703_v55, %v639_v46 }
 0x114   :  { %v731_v28 = vmax.f32 %v704_v20, 0.0 }
 0x119   :  { %v646_v52 = vpop.f32.mrf.mxu0  ;;  %v707_v11 = vpop.f32.mrf.mxu1 }
 0x11a   :  { %v647_v24 = vadd.f32 %v646_v52, %v542_v21  ;;  %v708_v23 = vadd.f32 %v707_v11, %v643_v33 }
 0x11c   :  { %v732_v61 = vmax.f32 %v708_v23, 0.0 }
 0x121   :  { %v650_v0 = vpop.f32.mrf.mxu0  ;;  %v711_v7 = vpop.f32.mrf.mxu1 }
 0x122   :  { %v651_v18 = vadd.f32 %v650_v0, %v548_v37  ;;  %v712_v38 = vadd.f32 %v711_v7, %v647_v24  ;;  %v730_v0 = vmax.f32 %v1826_v3, 0.0  ;;  %v1856_v7 = vand.u32 4294901760, %v732_v61 }
 0x123   :  { %v1871_v3 = vand.u32 4294901760, %v731_v28 }
 0x124   :  { %v733_v47 = vmax.f32 %v712_v38, 0.0  ;;  %v1880_v1 = vand.u32 4294901760, %v730_v0  ;;  %v1883_v2 = vsub.f32 %v732_v61, %v1856_v7 }
 0x125   :  { %v1894_v54 = vsub.f32 %v731_v28, %v1871_v3 }
 0x126   :  { %v1845_v52 = vand.u32 4294901760, %v733_v47  ;;  %v876_v13 = vand.u32 4294901760, %v1883_v2 }
 0x127   :  { %v882_v17 = vand.u32 4294901760, %v1894_v54 }
 0x128   :  { %v1874_v51 = vsub.f32 %v733_v47, %v1845_v52 }
 0x129   :  { %v654_v29 = vpop.f32.mrf.mxu0  ;;  %v715_v41 = vpop.f32.mrf.mxu1  ;;  %v883_v38 = vsub.f32 %v1894_v54, %v882_v17 }
 0x12a   :  { %v655_v63 = vadd.f32 %v654_v29, %v554_v44  ;;  %v716_v25 = vadd.f32 %v715_v41, %v651_v18  ;;  %v1868_v41 = vsub.f32 %v768_v26, %v1843_v4  ;;  %v870_v56 = vand.u32 4294901760, %v1874_v51 }
 0x12c   :  { %v734_v39 = vmax.f32 %v716_v25, 0.0  ;;  %v805_v44 = vand.u32 4294901760, %v1868_v41  ;;  %v871_v15 = vsub.f32 %v1874_v51, %v870_v56  ;;  %v877_v25 = vsub.f32 %v1883_v2, %v876_v13 }
 0x12e   :  { %v1838_v48 = vand.u32 4294901760, %v734_v39  ;;  %v806_v21 = vsub.f32 %v1868_v41, %v805_v44  ;;  %v878_v6 = vand.u32 4294901760, %v877_v25 }
 0x130   :  { %v1859_v22 = vsub.f32 %v734_v39, %v1838_v48  ;;  %v807_v9 = vand.u32 4294901760, %v806_v21 }
 0x131   :  { %v719_v58 = vpop.f32.mrf.mxu1  ;;  %v658_v31 = vpop.f32.mrf.mxu0 }
 0x132   :  { %v659_v5 = vadd.f32 %v658_v31, %v560_v50  ;;  %v720_v8 = vadd.f32 %v719_v58, %v655_v63  ;;  %v864_v30 = vand.u32 4294901760, %v1859_v22  ;;  %v1890_v50 = vand.u32 4294901760, %v771_v43  ;;  %v740_v63 = vld [vmem:[%s1980_s3 + $0x10] sm:$0xff] }
 0x134   :  { %v735_v57 = vmax.f32 %v720_v8, 0.0  ;;  %v1913_v19 = vsub.f32 %v771_v43, %v1890_v50  ;;  %v774_v8 = vsel %vm766_vm1, %v740_v63, 0 }
 0x136   :  { %v1836_v53 = vand.u32 4294901760, %v735_v57  ;;  %v813_v33 = vand.u32 4294901760, %v1913_v19 }
 0x138   :  { %v1848_v11 = vsub.f32 %v735_v57, %v1836_v53  ;;  %v741_v57 = vld [vmem:[%s1980_s3 + $0x18] sm:$0xff]  ;;  %v814_v39 = vsub.f32 %v1913_v19, %v813_v33 }
 0x139   :  { %v723_v40 = vpop.f32.mrf.mxu1  ;;  %v662_v14 = vpop.f32.mrf.mxu0 }
 0x13a   :  { %v724_v34 = vadd.f32 %v723_v40, %v659_v5  ;;  %v663_v12 = vadd.f32 %v662_v14, %v566_v10  ;;  %v858_v62 = vand.u32 4294901760, %v1848_v11  ;;  %v1903_v5 = vsub.f32 %v730_v0, %v1880_v1 }
 0x13b   :  { %v865_v40 = vsub.f32 %v1859_v22, %v864_v30  ;;  %v819_v14 = vand.u32 4294901760, %v774_v8  ;;  %v872_v10 = vand.u32 4294901760, %v871_v15  ;;  %v815_v20 = vand.u32 4294901760, %v814_v39 }
 0x13c   :  { %v736_v32 = vmax.f32 %v724_v34, 0.0  ;;  %v859_v37 = vsub.f32 %v1848_v11, %v858_v62  ;;  %v888_v24 = vand.u32 4294901760, %v1903_v5 }
 0x13d   :  { %v820_v46 = vsub.f32 %v774_v8, %v819_v14  ;;  %v1113_v8 = vld [vmem:[%s1982_s5] sm:$0x3]  ;;  %s1358_s5 = smov [#allocation2]  }
 0x13e   :  { %v1833_v42 = vand.u32 4294901760, %v736_v32  ;;  %v860_v34 = vand.u32 4294901760, %v859_v37  ;;  %v889_v23 = vsub.f32 %v1903_v5, %v888_v24  ;;  %s1315_s9 = sshll.u32 %s1358_s5, 4  ;;  %s1316_s9 = int_to_ptr.vmem [resolvable:$true] %s1315_s9 }
 0x13f   :  { %v821_v47 = vand.u32 4294901760, %v820_v46 }
 0x140   :  { %v1841_v35 = vsub.f32 %v736_v32, %v1833_v42  ;;  %v866_v32 = vand.u32 4294901760, %v865_v40  ;;  %v890_v26 = vand.u32 4294901760, %v889_v23 }
 0x141   :  { %v727_v49 = vpop.f32.mrf.mxu1  ;;  %v822_v61 = vsub.f32 %v820_v46, %v821_v47 }
 0x142   :  { %v728_v60 = vadd.f32 %v727_v49, %v663_v12  ;;  %v852_v29 = vand.u32 4294901760, %v1841_v35  ;;  %v777_v12 = vsel %vm766_vm1, %v741_v57, 0  ;;  %v884_v49 = vand.u32 4294901760, %v883_v38 }
 0x144   :  { %v737_v45 = vmax.f32 %v728_v60, 0.0  ;;  %v853_v36 = vsub.f32 %v1841_v35, %v852_v29  ;;  %v827_v60 = vand.u32 4294901760, %v777_v12 }
 0x146   :  { %v1850_v55 = vand.u32 4294901760, %v737_v45  ;;  %v854_v18 = vand.u32 4294901760, %v853_v36 }
 0x148   :  { %v1862_v27 = vsub.f32 %v737_v45, %v1850_v55  ;;  %788 = vmatpush.msrb.mxu2 %v1850_v55  ;;  %1077 = vmatpush.msra.mxu1 %v1850_v55  ;;  %v823_v45 = vand.u32 4294901760, %v822_v61 }
 0x14a   :  { %790 = vmatpush.msrb.mxu2 %v1833_v42  ;;  %1079 = vmatpush.msra.mxu1 %v1833_v42  ;;  %v846_v58 = vand.u32 4294901760, %v1862_v27 }
 0x14c   :  { %792 = vmatpush.msrb.mxu2 %v1836_v53  ;;  %1022 = vmatpush.msra.mxu0 %v846_v58  ;;  %v847_v31 = vsub.f32 %v1862_v27, %v846_v58  ;;  %v754_v58 = vpop.permute.xlu1 %753 }
 0x14d   :  { %1081 = vmatpush.msra.mxu1 %v1836_v53 }
 0x14e   :  { %794 = vmatpush.msrb.mxu2 %v1838_v48  ;;  %1026 = vmatpush.msra.mxu0 %v852_v29  ;;  %v848_v16 = vand.u32 4294901760, %v847_v31 }
 0x14f   :  { %1083 = vmatpush.msra.mxu1 %v1838_v48 }
 0x150   :  { %796 = vmatpush.msrb.mxu2 %v1845_v52  ;;  %849 = vmatpush.msrb.mxu3 %v848_v16 }
 0x151   :  { %1030 = vmatpush.msra.mxu0 %v858_v62  ;;  %1085 = vmatpush.msra.mxu1 %v1845_v52 }
 0x152   :  { %798 = vmatpush.msrb.mxu2 %v1856_v7  ;;  %855 = vmatpush.msrb.mxu3 %v854_v18 }
 0x153   :  { %1034 = vmatpush.msra.mxu0 %v864_v30  ;;  %1087 = vmatpush.msra.mxu1 %v1856_v7 }
 0x154   :  { %800 = vmatpush.msrb.mxu2 %v1871_v3  ;;  %861 = vmatpush.msrb.mxu3 %v860_v34 }
 0x155   :  { %1038 = vmatpush.msra.mxu0 %v870_v56  ;;  %1089 = vmatpush.msra.mxu1 %v1871_v3 }
 0x156   :  { %802 = vmatpush.msrb.mxu2 %v1880_v1  ;;  %867 = vmatpush.msrb.mxu3 %v866_v32  ;;  %v1122_v32 = vsel %vm1120_vm2, %v1113_v8, 0 }
 0x157   :  { %1042 = vmatpush.msra.mxu0 %v876_v13  ;;  %1091 = vmatpush.msra.mxu1 %v1880_v1  ;;  %v1968_v38 = vand.u32 4294901760, %v1122_v32 }
 0x158   :  { %808 = vmatmul.f32.vlgmr.msrb.gmra.mxu2 %v807_v9  ;;  %873 = vmatpush.msrb.mxu3 %v872_v10 }
 0x159   :  { %919 = vmatpush.msra.mxu2 %v1862_v27  ;;  %1046 = vmatpush.msra.mxu0 %v882_v17 }
 0x15a   :  { %879 = vmatpush.msrb.mxu3 %v878_v6  ;;  %1093 = vmatmul.f32.vlgmr.msra.gmra.mxu1 %v1843_v4 }
 0x15b   :  { %922 = vmatpush.msra.mxu2 %v1841_v35  ;;  %1050 = vmatpush.msra.mxu0 %v888_v24  ;;  %v828_v35 = vsub.f32 %v777_v12, %v827_v60 }
 0x15c   :  { %885 = vmatpush.msrb.mxu3 %v884_v49  ;;  %1052 = vmatmul.f32.vlgmr.msra.gmra.mxu0 %v1843_v4 }
 0x15d   :  { %925 = vmatpush.msra.mxu2 %v1848_v11  ;;  %v829_v28 = vand.u32 4294901760, %v828_v35 }
 0x15e   :  { %891 = vmatpush.msrb.mxu3 %v890_v26 }
 0x15f   :  { %928 = vmatpush.msra.mxu2 %v1859_v22  ;;  %893 = vmatmul.f32.vlgmr.msrb.gmra.mxu3 %v1843_v4 }
 0x160   :  { %816 = vmatmul.f32.gmra.mxu2 %v815_v20  ;;  %971 = vmatpush.msra.mxu3 %v1850_v55  ;;  %v1145_v20 = vsub.f32 %v1122_v32, %v1968_v38 }
 0x161   :  { %931 = vmatpush.msra.mxu2 %v1874_v51 }
 0x162   :  { %973 = vmatpush.msra.mxu3 %v1833_v42  ;;  %1097 = vmatmul.f32.gmra.mxu1 %v1890_v50  ;;  %v830_v42 = vsub.f32 %v828_v35, %v829_v28 }
 0x163   :  { %934 = vmatpush.msra.mxu2 %v1883_v2 }
 0x164   :  { %975 = vmatpush.msra.mxu3 %v1836_v53  ;;  %1056 = vmatmul.f32.gmra.mxu0 %v1890_v50  ;;  %v831_v53 = vand.u32 4294901760, %v830_v42 }
 0x165   :  { %937 = vmatpush.msra.mxu2 %v1894_v54 }
 0x166   :  { %977 = vmatpush.msra.mxu3 %v1838_v48 }
 0x167   :  { %940 = vmatpush.msra.mxu2 %v1903_v5  ;;  %897 = vmatmul.f32.gmra.mxu3 %v1890_v50 }
 0x168   :  { %824 = vmatmul.f32.gmra.mxu2 %v823_v45  ;;  %979 = vmatpush.msra.mxu3 %v1845_v52 }
 0x16a   :  { %981 = vmatpush.msra.mxu3 %v1856_v7  ;;  %1101 = vmatmul.f32.gmra.mxu1 %v819_v14 }
 0x16c   :  { %983 = vmatpush.msra.mxu3 %v1871_v3  ;;  %1060 = vmatmul.f32.gmra.mxu0 %v819_v14 }
 0x16e   :  { %985 = vmatpush.msra.mxu3 %v1880_v1 }
 0x16f   :  { %901 = vmatmul.f32.gmra.mxu3 %v819_v14 }
 0x170   :  { %832 = vmatmul.f32.gmra.mxu2 %v831_v53 }
 0x172   :  { %1105 = vmatmul.f32.gmra.mxu1 %v827_v60 }
 0x174   :  { %1064 = vmatmul.f32.gmra.mxu0 %v827_v60 }
 0x177   :  { %905 = vmatmul.f32.gmra.mxu3 %v827_v60 }
 0x178   :  { %943 = vmatmul.f32.vlgmr.msra.gmra.mxu2 %v1868_v41  ;;  %v764_v41 = vpop.permute.xlu2 %763 }
 0x17f   :  { %989 = vmatmul.f32.vlgmr.msra.gmra.mxu3 %v805_v44  ;;  %v759_v44 = vpop.permute.xlu0 %758 }
 0x180   :  { %948 = vmatmul.f32.gmra.mxu2 %v1913_v19  ;;  %v749_v2 = vpop.permute.xlu2 %748 }
 0x187   :  { %995 = vmatmul.f32.gmra.mxu3 %v813_v33 }
 0x188   :  { %953 = vmatmul.f32.gmra.mxu2 %v820_v46 }
 0x18f   :  { %1001 = vmatmul.f32.gmra.mxu3 %v821_v47 }
 0x190   :  { %958 = vmatmul.f32.gmra.mxu2 %v828_v35 }
 0x197   :  { %1007 = vmatmul.f32.gmra.mxu3 %v829_v28  ;;  %v1146_v28 = vand.u32 4294901760, %v1145_v20 }
 0x1d7   :  { %v1094_v29 = vpop.f32.mrf.mxu1 }
 0x1d9   :  { %v1053_v27 = vpop.f32.mrf.mxu0 }
 0x1db   :  { %v809_v48 = vpop.f32.mrf.mxu2 }
 0x1dc   :  { %v810_v31 = vadd.f32 %v809_v48, %v749_v2 }
 0x1df   :  { %v1098_v62 = vpop.f32.mrf.mxu1 }
 0x1e1   :  { %v1057_v51 = vpop.f32.mrf.mxu0 }
 0x1e2   :  { %v894_v4 = vpop.f32.mrf.mxu3 }
 0x1e3   :  { %v817_v52 = vpop.f32.mrf.mxu2  ;;  %v895_v54 = vadd.f32 %v894_v4, %v810_v31 }
 0x1e4   :  { %v818_v1 = vadd.f32 %v817_v52, %v754_v58 }
 0x1e7   :  { %v1102_v19 = vpop.f32.mrf.mxu1 }
 0x1e9   :  { %v1061_v13 = vpop.f32.mrf.mxu0 }
 0x1ea   :  { %v898_v11 = vpop.f32.mrf.mxu3 }
 0x1eb   :  { %v825_v55 = vpop.f32.mrf.mxu2  ;;  %v899_v36 = vadd.f32 %v898_v11, %v818_v1  ;;  %v1147_v11 = vsub.f32 %v1145_v20, %v1146_v28 }
 0x1ec   :  { %v826_v16 = vadd.f32 %v825_v55, %v759_v44 }
 0x1ef   :  { %v1106_v26 = vpop.f32.mrf.mxu1 }
 0x1f1   :  { %v1065_v46 = vpop.f32.mrf.mxu0 }
 0x1f2   :  { %v902_v59 = vpop.f32.mrf.mxu3 }
 0x1f3   :  { %v833_v0 = vpop.f32.mrf.mxu2  ;;  %v903_v56 = vadd.f32 %v902_v59, %v826_v16 }
 0x1f4   :  { %v834_v17 = vadd.f32 %v833_v0, %v764_v41 }
 0x1fa   :  { %v906_v7 = vpop.f32.mrf.mxu3 }
 0x1fb   :  { %v944_v22 = vpop.f32.mrf.mxu2  ;;  %v907_v33 = vadd.f32 %v906_v7, %v834_v17 }
 0x1fc   :  { %v945_v63 = vadd.f32 %v944_v22, %v895_v54 }
 0x202   :  { %v990_v43 = vpop.f32.mrf.mxu3 }
 0x203   :  { %v949_v3 = vpop.f32.mrf.mxu2  ;;  %v991_v18 = vadd.f32 %v990_v43, %v945_v63 }
 0x204   :  { %v950_v37 = vadd.f32 %v949_v3, %v899_v36  ;;  %v1118_v36 = vpop.permute.xlu0 %1117 }
 0x205   :  { %v1054_v25 = vadd.f32 %v1053_v27, %v991_v18  ;;  %v1148_v27 = vand.u32 4294901760, %v1147_v11 }
 0x207   :  { %v1095_v57 = vadd.f32 %v1094_v29, %v1054_v25 }
 0x209   :  { %v1109_v47 = vmax.f32 %v1095_v57, 0.0 }
 0x20a   :  { %v996_v30 = vpop.f32.mrf.mxu3 }
 0x20b   :  { %v954_v50 = vpop.f32.mrf.mxu2  ;;  %v997_v5 = vadd.f32 %v996_v30, %v950_v37  ;;  %v1142_v42 = vand.u32 4294901760, %v1109_v47 }
 0x20c   :  { %v955_v40 = vadd.f32 %v954_v50, %v903_v56 }
 0x20d   :  { %v1058_v34 = vadd.f32 %v1057_v51, %v997_v5  ;;  %v1184_v55 = vsub.f32 %v1109_v47, %v1142_v42 }
 0x20f   :  { %v1099_v14 = vadd.f32 %v1098_v62, %v1058_v34  ;;  %v1185_v43 = vand.u32 4294901760, %v1184_v55 }
 0x211   :  { %v1110_v12 = vmax.f32 %v1099_v14, 0.0  ;;  %v1186_v62 = vsub.f32 %v1184_v55, %v1185_v43 }
 0x212   :  { %v1002_v21 = vpop.f32.mrf.mxu3 }
 0x213   :  { %v1003_v15 = vadd.f32 %v1002_v21, %v955_v40  ;;  %v959_v9 = vpop.f32.mrf.mxu2  ;;  %v1140_v35 = vand.u32 4294901760, %v1110_v12  ;;  %v1187_v2 = vand.u32 4294901760, %v1186_v62 }
 0x214   :  { %v960_v6 = vadd.f32 %v959_v9, %v907_v33 }
 0x215   :  { %v1062_v24 = vadd.f32 %v1061_v13, %v1003_v15  ;;  %v1178_v4 = vsub.f32 %v1110_v12, %v1140_v35 }
 0x217   :  { %v1103_v10 = vadd.f32 %v1102_v19, %v1062_v24  ;;  %v1179_v22 = vand.u32 4294901760, %v1178_v4 }
 0x219   :  { %v1111_v23 = vmax.f32 %v1103_v10, 0.0  ;;  %v1180_v51 = vsub.f32 %v1178_v4, %v1179_v22 }
 0x21a   :  { %v1008_v39 = vpop.f32.mrf.mxu3 }
 0x21b   :  { %v1009_v49 = vadd.f32 %v1008_v39, %v960_v6  ;;  %v1138_v60 = vand.u32 4294901760, %v1111_v23  ;;  %v1181_v1 = vand.u32 4294901760, %v1180_v51 }
 0x21d   :  { %v1066_v61 = vadd.f32 %v1065_v46, %v1009_v49  ;;  %v1172_v53 = vsub.f32 %v1111_v23, %v1138_v60 }
 0x21f   :  { %v1107_v45 = vadd.f32 %v1106_v26, %v1066_v61  ;;  %v1173_v0 = vand.u32 4294901760, %v1172_v53 }
 0x221   :  { %v1112_v48 = vmax.f32 %v1107_v45, 0.0  ;;  %v1174_v41 = vsub.f32 %v1172_v53, %v1173_v0 }
 0x223   :  { %v1136_v52 = vand.u32 4294901760, %v1112_v48  ;;  %v1175_v58 = vand.u32 4294901760, %v1174_v41 }
 0x225   :  { %v1166_v59 = vsub.f32 %v1112_v48, %v1136_v52  ;;  %1137 = vmatpush.msrb.mxu2 %v1136_v52 }
 0x227   :  { %v1167_v7 = vand.u32 4294901760, %v1166_v59  ;;  %1139 = vmatpush.msrb.mxu2 %v1138_v60 }
 0x229   :  { %v1168_v29 = vsub.f32 %v1166_v59, %v1167_v7  ;;  %1141 = vmatpush.msrb.mxu2 %v1140_v35 }
 0x22b   :  { %1143 = vmatpush.msrb.mxu2 %v1142_v42  ;;  %v1169_v3 = vand.u32 4294901760, %v1168_v29 }
 0x22c   :  { %1149 = vmatmul.f32.vlgmr.msrb.gmra.mxu2 %v1148_v27 }
 0x22d   :  { %1208 = vmatpush.msra.mxu2 %v1166_v59  ;;  %1170 = vmatpush.msrb.mxu3 %v1169_v3 }
 0x22f   :  { %1211 = vmatpush.msra.mxu2 %v1172_v53  ;;  %1176 = vmatpush.msrb.mxu3 %v1175_v58 }
 0x231   :  { %1214 = vmatpush.msra.mxu2 %v1178_v4  ;;  %1182 = vmatpush.msrb.mxu3 %v1181_v1 }
 0x233   :  { %1217 = vmatpush.msra.mxu2 %v1184_v55  ;;  %1188 = vmatpush.msrb.mxu3 %v1187_v2 }
 0x234   :  { %1190 = vmatmul.f32.vlgmr.msrb.gmra.mxu3 %v1968_v38  ;;  %1220 = vmatmul.f32.vlgmr.msra.gmra.mxu2 %v1145_v20 }
 0x235   :  { %1266 = vmatpush.msrb.mxu2 %v1167_v7  ;;  %1237 = vmatpush.msra.mxu3 %v1136_v52 }
 0x237   :  { %1270 = vmatpush.msrb.mxu2 %v1173_v0  ;;  %1239 = vmatpush.msra.mxu3 %v1138_v60 }
 0x239   :  { %1274 = vmatpush.msrb.mxu2 %v1179_v22  ;;  %1241 = vmatpush.msra.mxu3 %v1140_v35 }
 0x23b   :  { %1278 = vmatpush.msrb.mxu2 %v1185_v43  ;;  %1243 = vmatpush.msra.mxu3 %v1142_v42 }
 0x23c   :  { %1247 = vmatmul.f32.vlgmr.msra.gmra.mxu3 %v1146_v28  ;;  %1280 = vmatmul.f32.vlgmr.msrb.gmra.mxu2 %v1968_v38 }
 0x23d   :  { %1297 = vmatpush.msrb.mxu3 %v1136_v52 }
 0x23f   :  { %1299 = vmatpush.msrb.mxu3 %v1138_v60 }
 0x241   :  { %1301 = vmatpush.msrb.mxu3 %v1140_v35 }
 0x243   :  { %1303 = vmatpush.msrb.mxu3 %v1142_v42 }
 0x244   :  { %1305 = vmatmul.f32.vlgmr.msrb.gmra.mxu3 %v1968_v38 }
 0x2af   :  { %v1150_v30 = vpop.f32.mrf.mxu2 }
 0x2b0   :  { %v1151_v50 = vadd.f32 %v1150_v30, %v1118_v36 }
 0x2b7   :  { %v1191_v31 = vpop.f32.mrf.mxu3  ;;  %v1221_v44 = vpop.f32.mrf.mxu2 }
 0x2b8   :  { %v1192_v54 = vadd.f32 %v1191_v31, %v1151_v50 }
 0x2ba   :  { %v1222_v37 = vadd.f32 %v1221_v44, %v1192_v54 }
 0x2bf   :  { %v1248_v16 = vpop.f32.mrf.mxu3  ;;  %v1281_v63 = vpop.f32.mrf.mxu2 }
 0x2c0   :  { %v1249_v56 = vadd.f32 %v1248_v16, %v1222_v37 }
 0x2c2   :  { %v1282_v5 = vadd.f32 %v1281_v63, %v1249_v56 }
 0x2c7   :  { %v1306_v13 = vpop.f32.mrf.mxu3 }
 0x2c8   :  { %v1307_v18 = vadd.f32 %v1306_v13, %v1282_v5 }
 0x2ca   :  { %1309 = vst [vmem:[#allocation2] sm:$0x3] %v1307_v18 }
 0x2cb   :  { %1320 = dma.vmem_to_hbm [thread:$0]  %s1316_s9, 32, %s1318_s12, [#allocation3]  }
 0x2cc   :  { %1355 = dma.done.wait [#allocation3], 32  }
 0x2cd   :  { %1356 = vsyncadd [#allocation3], 4294967264 }
 0x2ce   :  { %1325 = vsyncpa [#allocation3], 1 }

</bundles_post_ra>
